<compile_context>
chip_gen: v6e
topology: v6e:2x2x1
jax: 0.10.0
libtpu: 0.0.40
codegen_flags: <defaults>
</compile_context>

<pallas_src>
import functools

import jax
import jax.numpy as jnp
from jax import lax
from jax.experimental import pallas as pl
from jax.experimental.pallas import tpu as pltpu


def _loss_eikonal_kernel(N, n_total, block_n, chunk, cdt,
                         x_ref, tgt_ref,
                         w1t_ref, b1_ref, w2t_ref, b2_ref, w2_ref,
                         w1r_ref, w3_ref, b3_ref,
                         out_ref):
    i = pl.program_id(0)

    # ---- tile-invariant weight loads (hoisted out of the chunk loop) ----
    w1t = w1t_ref[...]            # (H, 3)  compute dtype
    w1x = w1t[:, 0:1]             # hoisted column broadcasts (reused, not re-sliced)
    w1y = w1t[:, 1:2]
    w1z = w1t[:, 2:3]
    b1 = b1_ref[...]              # (H, 1)
    w2t = w2t_ref[...]            # (H, H)
    b2 = b2_ref[...]              # (H, 1)
    w2 = w2_ref[...]              # (H, H)
    w1r = w1r_ref[...]            # (3, H)  for the gradient projection dot
    w3 = w3_ref[...]              # (H, 1)
    b3 = b3_ref[...]              # (1, 1)  f32

    n_chunks = block_n // chunk
    base_col = i * block_n
    lane_iota = lax.broadcasted_iota(jnp.int32, (1, chunk), 1)

    def chunk_body(c, carry):
        acc_e, acc_h, acc_d = carry
        off = pl.multiple_of(c * chunk, chunk)

        xc = x_ref[:, pl.ds(off, chunk)].astype(cdt)        # (3, C)
        tgt = tgt_ref[:, pl.ds(off, chunk)]                 # (1, C) f32

        # masks generated in-kernel from the global column index
        col = base_col + off + lane_iota                    # (1, C) int32
        m_eqn = (col < N).astype(jnp.float32)
        m_data = jnp.logical_and(col >= N, col < n_total).astype(jnp.float32)

        # ---- fused forward pass (compute dtype) ----
        # layer 1 (K = 3): three VPU outer-product FMAs (MXU kept for HxH work).
        # TODO(synk): if a bundle dump shows VALU binding, fold this into a
        # stacked (H,4)x(4,C) MXU dot instead.
        z1 = w1x * xc[0:1, :] + w1y * xc[1:2, :] + w1z * xc[2:3, :] + b1   # (H, C)
        h1 = jnp.tanh(z1)
        z2 = jnp.dot(w2t, h1, preferred_element_type=cdt) + b2             # (H, C) MXU
        h2 = jnp.tanh(z2)
        # 1-unit output head: broadcast-multiply + f32 sublane reduce.
        tau = jnp.sum((w3 * h2).astype(jnp.float32), axis=0, keepdims=True) + b3  # (1, C)

        # ---- analytic d tau / d x (backprop through the tanh MLP) ----
        g2 = (1.0 - h2 * h2) * w3                                          # (H, C)
        g1 = jnp.dot(w2, g2, preferred_element_type=cdt) * (1.0 - h1 * h1) # (H, C) MXU
        grad3 = jnp.dot(w1r, g1, preferred_element_type=jnp.float32)       # (3, C) MXU
        grad_sq = (grad3[0:1, :] * grad3[0:1, :]
                   + grad3[1:2, :] * grad3[1:2, :]
                   + grad3[2:3, :] * grad3[2:3, :])                        # (1, C) f32

        # ---- masked residuals + per-lane f32 accumulation ----
        res_eqn = (grad_sq - tgt) * m_eqn
        heav = 2.0 * jnp.maximum(-tau, 0.0) * m_eqn        # == (1 - sign(tau))*|tau|
        res_data = (tau - tgt) * m_data

        return (acc_e + res_eqn * res_eqn,
                acc_h + heav * heav,
                acc_d + res_data * res_data)

    zero = jnp.zeros((1, chunk), jnp.float32)
    acc_e, acc_h, acc_d = lax.fori_loop(0, n_chunks, chunk_body,
                                        (zero, zero, zero), unroll=True)

    # ---- fold per-lane partials into one lane-dense (8, 128) output block ----
    def fold(a):
        return jnp.sum(a.reshape(chunk // 128, 128), axis=0, keepdims=True)

    out_ref[...] = jnp.concatenate(
        [fold(acc_e), fold(acc_h), fold(acc_d),
         jnp.zeros((5, 128), jnp.float32)], axis=0)


def loss_eikonal_pallas(inputs, vel, data_pts, data, mlp_params,
                        w_eqn=1.0, w_data=5.0, w_heav=1.0,
                        block_n=4096, chunk=512,
                        compute_dtype=jnp.float32):
    """Returns (loss_total, loss_eqn, loss_data) exactly like LossEikonal.forward."""
    w1, b1, w2, b2, w3, b3 = mlp_params
    f32 = jnp.float32
    cdt = compute_dtype
    N = int(inputs.shape[0])
    M = int(data_pts.shape[0])
    H = int(w1.shape[1])

    chunk = min(chunk, block_n)
    assert block_n % 128 == 0, "block_n must be a multiple of 128"
    assert chunk % 128 == 0 and block_n % chunk == 0

    n_total = N + M
    num_tiles = pl.cdiv(n_total, block_n)
    n_pad = num_tiles * block_n
    pad = n_pad - n_total

    # --- fuse training points and receivers into one padded, features-first batch ---
    velf = vel.astype(f32)
    coords = jnp.concatenate([inputs, data_pts], axis=0).astype(f32)           # (N+M, 3)
    tgt = jnp.concatenate([1.0 / (velf * velf), data.astype(f32)], axis=0)     # (N+M, 1)
    coords = jnp.pad(coords, ((0, pad), (0, 0)))
    tgt = jnp.pad(tgt, ((0, pad), (0, 0)))
    xb = coords.T       # (3, n_pad)   points on the lane axis
    tgt_t = tgt.T       # (1, n_pad)

    # weight copies in the layouts/dtypes the kernel wants (plain-JAX glue, done once)
    w1t = w1.T.astype(cdt)    # (H, 3)
    b1t = b1.T.astype(cdt)    # (H, 1)
    w2t = w2.T.astype(cdt)    # (H, H)
    b2t = b2.T.astype(cdt)    # (H, 1)
    w2f = w2.astype(cdt)      # (H, H)
    w1r = w1.astype(cdt)      # (3, H)  gradient projection
    w3f = w3.astype(cdt)      # (H, 1)
    b3f = b3.astype(f32)      # (1, 1)

    T = block_n
    data_specs = [
        pl.BlockSpec((3, T), lambda i: (0, i)),
        pl.BlockSpec((1, T), lambda i: (0, i)),
    ]
    const = lambda i: (0, 0)   # weights: full-array blocks, stay VMEM-resident
    weight_specs = [
        pl.BlockSpec((H, 3), const),
        pl.BlockSpec((H, 1), const),
        pl.BlockSpec((H, H), const),
        pl.BlockSpec((H, 1), const),
        pl.BlockSpec((H, H), const),
        pl.BlockSpec((3, H), const),
        pl.BlockSpec((H, 1), const),
        pl.BlockSpec((1, 1), const),
    ]

    kernel = functools.partial(_loss_eikonal_kernel, N, n_total, T, chunk, cdt)

    # Blocked per-tile partial sums (lane-dense, unmasked stores); no cross-tile
    # state, so the point axis can be sharded across TensorCores on v7x.
    partials = pl.pallas_call(
        kernel,
        grid=(num_tiles,),
        out_shape=jax.ShapeDtypeStruct((num_tiles, 8, 128), f32),
        in_specs=data_specs + weight_specs,
        out_specs=pl.BlockSpec((None, 8, 128), lambda i: (i, 0, 0)),
        compiler_params=pltpu.CompilerParams(
            dimension_semantics=("parallel",)),
    )(xb, tgt_t, w1t, b1t, w2t, b2t, w2f, w1r, w3f, b3f)

    sums = jnp.sum(partials, axis=(0, 2))      # (8,) tiny wrapper reduction
    loss_eqn = sums[0] / N
    loss_heav = sums[1] / N
    loss_data = sums[2] / M if M > 0 else jnp.float32(0.0)
    loss_total = w_eqn * loss_eqn + w_data * loss_data + w_heav * loss_heav
    return loss_total, loss_eqn, loss_data


# ---------------------------------------------------------------------------
# Pure-JAX reference (uses jax.grad for d tau / d inputs) for validation.
# ---------------------------------------------------------------------------
def _mlp_apply(p, params):
    w1, b1, w2, b2, w3, b3 = params
    h1 = jnp.tanh(p @ w1 + b1)
    h2 = jnp.tanh(h1 @ w2 + b2)
    return h2 @ w3 + b3


def loss_eikonal_ref(inputs, vel, data_pts, data, params,
                     w_eqn=1.0, w_data=5.0, w_heav=1.0):
    tau = _mlp_apply(inputs, params)
    tau_data = _mlp_apply(data_pts, params)

    def scalar_tau(p):
        return _mlp_apply(p[None, :], params)[0, 0]

    g = jax.vmap(jax.grad(scalar_tau))(inputs)                 # (N, 3)
    grad_sq = jnp.sum(g * g, axis=1, keepdims=True)
    loss_eqn = jnp.mean((grad_sq - 1.0 / vel ** 2) ** 2)
    loss_heav = jnp.mean(((1.0 - jnp.sign(tau)) * jnp.abs(tau)) ** 2)
    loss_data = jnp.mean((tau_data - data) ** 2)
    loss_total = w_eqn * loss_eqn + w_data * loss_data + w_heav * loss_heav
    return loss_total, loss_eqn, loss_data


if __name__ == "__main__":
    key = jax.random.PRNGKey(0)
    N, M, H = 500, 10, 32   # training points, receivers, hidden width

    keys = jax.random.split(key, 10)
    inputs = jax.random.uniform(keys[0], (N, 3), jnp.float32, -1.0, 1.0)
    vel = jax.random.uniform(keys[1], (N, 1), jnp.float32, 1.0, 3.0)
    data_pts = jax.random.uniform(keys[2], (M, 3), jnp.float32, -1.0, 1.0)
    data = jax.random.uniform(keys[3], (M, 1), jnp.float32, 0.0, 1.0)

    # Deterministic MLP "model" parameters (synthetic, not a checkpoint).
    w1 = jax.random.normal(keys[4], (3, H), jnp.float32) * 0.5
    b1 = jax.random.normal(keys[5], (1, H), jnp.float32) * 0.1
    w2 = jax.random.normal(keys[6], (H, H), jnp.float32) * (1.0 / jnp.sqrt(H))
    b2 = jax.random.normal(keys[7], (1, H), jnp.float32) * 0.1
    w3 = jax.random.normal(keys[8], (H, 1), jnp.float32) * (1.0 / jnp.sqrt(H))
    b3 = jax.random.normal(keys[9], (1, 1), jnp.float32) * 0.1
    params = (w1, b1, w2, b2, w3, b3)

    w_eqn, w_data, w_heav = 1.0, 5.0, 1.0

    ref_total, ref_eqn, ref_data = loss_eikonal_ref(
        inputs, vel, data_pts, data, params,
        w_eqn=w_eqn, w_data=w_data, w_heav=w_heav)

    # f32 compute: multi-tile (masked partial last tile) and single-tile configs.
    # Tolerances account for TPU default (bf16-pass) matmul precision in both
    # the kernel and the reference, with different contraction orderings.
    for block_n in (256, 4096):
        loss_total, loss_eqn, loss_data = loss_eikonal_pallas(
            inputs, vel, data_pts, data, params,
            w_eqn=w_eqn, w_data=w_data, w_heav=w_heav, block_n=block_n)
        jax.block_until_ready(loss_total)

        assert jnp.allclose(loss_total, ref_total, rtol=1e-2, atol=1e-4), \
            (block_n, loss_total, ref_total)
        assert jnp.allclose(loss_eqn, ref_eqn, rtol=1e-2, atol=1e-4), \
            (block_n, loss_eqn, ref_eqn)
        assert jnp.allclose(loss_data, ref_data, rtol=1e-2, atol=1e-4), \
            (block_n, loss_data, ref_data)

    # bf16 compute path (v6e/v7x VPU/EUP throughput); looser tolerance.
    bt, be, bd = loss_eikonal_pallas(
        inputs, vel, data_pts, data, params,
        w_eqn=w_eqn, w_data=w_data, w_heav=w_heav,
        block_n=4096, compute_dtype=jnp.bfloat16)
    jax.block_until_ready(bt)
    assert jnp.allclose(bt, ref_total, rtol=1e-1, atol=1e-3), (bt, ref_total)
    assert jnp.allclose(be, ref_eqn, rtol=1e-1, atol=1e-3), (be, ref_eqn)
    assert jnp.allclose(bd, ref_data, rtol=1e-1, atol=1e-3), (bd, ref_data)

    print("KERNEL_OK")
</pallas_src>

<mosaic_0001>
module attributes {stable_mosaic.version = 11 : i64} {
  func.func @_loss_eikonal_kernel(%arg0: i32, %arg1: memref<3x256xf32, #tpu.memory_space<vmem>>, %arg2: memref<1x256xf32, #tpu.memory_space<vmem>>, %arg3: memref<32x3xf32, #tpu.memory_space<vmem>>, %arg4: memref<32x1xf32, #tpu.memory_space<vmem>>, %arg5: memref<32x32xf32, #tpu.memory_space<vmem>>, %arg6: memref<32x1xf32, #tpu.memory_space<vmem>>, %arg7: memref<32x32xf32, #tpu.memory_space<vmem>>, %arg8: memref<3x32xf32, #tpu.memory_space<vmem>>, %arg9: memref<32x1xf32, #tpu.memory_space<vmem>>, %arg10: memref<1x1xf32, #tpu.memory_space<vmem>>, %arg11: memref<1x8x128xf32, #tpu.memory_space<vmem>>) attributes {dimension_semantics = [#tpu.dimension_semantics<parallel>], iteration_bounds = array<i64: 2>, scalar_prefetch = 0 : i64, scratch_operands = 0 : i64, tpu.core_type = #tpu.core_type<tc>, window_params = [{transform_indices = @transform_0, window_bounds = array<i64: 3, 256>}, {transform_indices = @transform_1, window_bounds = array<i64: 1, 256>}, {pipeline_mode = #tpu.pipeline_mode<synchronous>, transform_indices = @transform_2, window_bounds = array<i64: 32, 3>}, {pipeline_mode = #tpu.pipeline_mode<synchronous>, transform_indices = @transform_3, window_bounds = array<i64: 32, 1>}, {pipeline_mode = #tpu.pipeline_mode<synchronous>, transform_indices = @transform_4, window_bounds = array<i64: 32, 32>}, {pipeline_mode = #tpu.pipeline_mode<synchronous>, transform_indices = @transform_5, window_bounds = array<i64: 32, 1>}, {pipeline_mode = #tpu.pipeline_mode<synchronous>, transform_indices = @transform_6, window_bounds = array<i64: 32, 32>}, {pipeline_mode = #tpu.pipeline_mode<synchronous>, transform_indices = @transform_7, window_bounds = array<i64: 3, 32>}, {pipeline_mode = #tpu.pipeline_mode<synchronous>, transform_indices = @transform_8, window_bounds = array<i64: 32, 1>}, {pipeline_mode = #tpu.pipeline_mode<synchronous>, transform_indices = @transform_9, window_bounds = array<i64: 1, 1>}, {transform_indices = @transform_10, window_bounds = array<i64: 1, 8, 128>}]} {
    %c0 = arith.constant 0 : index
    %c0_0 = arith.constant 0 : index
    %0 = vector.load %arg3[%c0, %c0_0] : memref<32x3xf32, #tpu.memory_space<vmem>>, vector<32x3xf32>
    %1 = vector.extract_strided_slice %0 {offsets = [0, 0], sizes = [32, 1], strides = [1, 1]} : vector<32x3xf32> to vector<32x1xf32>
    %2 = vector.extract_strided_slice %0 {offsets = [0, 1], sizes = [32, 1], strides = [1, 1]} : vector<32x3xf32> to vector<32x1xf32>
    %3 = vector.extract_strided_slice %0 {offsets = [0, 2], sizes = [32, 1], strides = [1, 1]} : vector<32x3xf32> to vector<32x1xf32>
    %c0_1 = arith.constant 0 : index
    %c0_2 = arith.constant 0 : index
    %4 = vector.load %arg4[%c0_1, %c0_2] : memref<32x1xf32, #tpu.memory_space<vmem>>, vector<32x1xf32>
    %c0_3 = arith.constant 0 : index
    %c0_4 = arith.constant 0 : index
    %5 = vector.load %arg5[%c0_3, %c0_4] : memref<32x32xf32, #tpu.memory_space<vmem>>, vector<32x32xf32>
    %c0_5 = arith.constant 0 : index
    %c0_6 = arith.constant 0 : index
    %6 = vector.load %arg6[%c0_5, %c0_6] : memref<32x1xf32, #tpu.memory_space<vmem>>, vector<32x1xf32>
    %c0_7 = arith.constant 0 : index
    %c0_8 = arith.constant 0 : index
    %7 = vector.load %arg7[%c0_7, %c0_8] : memref<32x32xf32, #tpu.memory_space<vmem>>, vector<32x32xf32>
    %c0_9 = arith.constant 0 : index
    %c0_10 = arith.constant 0 : index
    %8 = vector.load %arg8[%c0_9, %c0_10] : memref<3x32xf32, #tpu.memory_space<vmem>>, vector<3x32xf32>
    %c0_11 = arith.constant 0 : index
    %c0_12 = arith.constant 0 : index
    %9 = vector.load %arg9[%c0_11, %c0_12] : memref<32x1xf32, #tpu.memory_space<vmem>>, vector<32x1xf32>
    %c0_13 = arith.constant 0 : index
    %c0_14 = arith.constant 0 : index
    %10 = vector.load %arg10[%c0_13, %c0_14] : memref<1x1xf32, #tpu.memory_space<vmem>>, vector<1x1xf32>
    %c256_i32 = arith.constant 256 : i32
    %11 = arith.muli %arg0, %c256_i32 : i32
    %12 = tpu.iota {dimensions = array<i32: 1>} : vector<1x256xi32>
    %cst = arith.constant 0.000000e+00 : f32
    %13 = vector.broadcast %cst : f32 to vector<1x256xf32>
    %c0_i32 = arith.constant 0 : i32
    %c256_i32_15 = arith.constant 256 : i32
    %14 = arith.muli %c0_i32, %c256_i32_15 : i32
    %15 = tpu.assume_multiple %14, 256 : i32
    %c0_16 = arith.constant 0 : index
    %16 = arith.index_cast %15 : i32 to index
    %17 = vector.load %arg1[%c0_16, %16] : memref<3x256xf32, #tpu.memory_space<vmem>>, vector<3x256xf32>
    %c0_17 = arith.constant 0 : index
    %18 = arith.index_cast %15 : i32 to index
    %19 = vector.load %arg2[%c0_17, %18] : memref<1x256xf32, #tpu.memory_space<vmem>>, vector<1x256xf32>
    %20 = arith.addi %11, %15 : i32
    %21 = vector.broadcast %20 : i32 to vector<1x256xi32>
    %22 = arith.addi %21, %12 : vector<1x256xi32>
    %c500_i32 = arith.constant 500 : i32
    %23 = vector.broadcast %c500_i32 : i32 to vector<1x256xi32>
    %24 = arith.cmpi slt, %22, %23 : vector<1x256xi32>
    %25 = arith.extui %24 : vector<1x256xi1> to vector<1x256xi32>
    %26 = arith.sitofp %25 : vector<1x256xi32> to vector<1x256xf32>
    %c500_i32_18 = arith.constant 500 : i32
    %27 = vector.broadcast %c500_i32_18 : i32 to vector<1x256xi32>
    %28 = arith.cmpi sge, %22, %27 : vector<1x256xi32>
    %c510_i32 = arith.constant 510 : i32
    %29 = vector.broadcast %c510_i32 : i32 to vector<1x256xi32>
    %30 = arith.cmpi slt, %22, %29 : vector<1x256xi32>
    %31 = arith.andi %28, %30 : vector<1x256xi1>
    %32 = arith.extui %31 : vector<1x256xi1> to vector<1x256xi32>
    %33 = arith.sitofp %32 : vector<1x256xi32> to vector<1x256xf32>
    %34 = vector.extract_strided_slice %17 {offsets = [0, 0], sizes = [1, 256], strides = [1, 1]} : vector<3x256xf32> to vector<1x256xf32>
    %35 = vector.broadcast %1 : vector<32x1xf32> to vector<32x256xf32>
    %36 = vector.broadcast %34 : vector<1x256xf32> to vector<32x256xf32>
    %37 = arith.mulf %35, %36 : vector<32x256xf32>
    %38 = vector.extract_strided_slice %17 {offsets = [1, 0], sizes = [1, 256], strides = [1, 1]} : vector<3x256xf32> to vector<1x256xf32>
    %39 = vector.broadcast %2 : vector<32x1xf32> to vector<32x256xf32>
    %40 = vector.broadcast %38 : vector<1x256xf32> to vector<32x256xf32>
    %41 = arith.mulf %39, %40 : vector<32x256xf32>
    %42 = arith.addf %37, %41 : vector<32x256xf32>
    %43 = vector.extract_strided_slice %17 {offsets = [2, 0], sizes = [1, 256], strides = [1, 1]} : vector<3x256xf32> to vector<1x256xf32>
    %44 = vector.broadcast %3 : vector<32x1xf32> to vector<32x256xf32>
    %45 = vector.broadcast %43 : vector<1x256xf32> to vector<32x256xf32>
    %46 = arith.mulf %44, %45 : vector<32x256xf32>
    %47 = arith.addf %42, %46 : vector<32x256xf32>
    %48 = vector.broadcast %4 : vector<32x1xf32> to vector<32x256xf32>
    %49 = arith.addf %47, %48 : vector<32x256xf32>
    %50 = math.tanh %49 : vector<32x256xf32>
    %cst_19 = arith.constant dense<0.000000e+00> : vector<32x256xf32>
    %51 = tpu.matmul %5, %50, %cst_19 {dimension_numbers = #tpu.dot_dimension_numbers<[1], [0], [0], [1], [0, 0, 1, 1], [], []>} : vector<32x32xf32>, vector<32x256xf32>, vector<32x256xf32> -> vector<32x256xf32>
    %52 = vector.broadcast %6 : vector<32x1xf32> to vector<32x256xf32>
    %53 = arith.addf %51, %52 : vector<32x256xf32>
    %54 = math.tanh %53 : vector<32x256xf32>
    %55 = vector.broadcast %9 : vector<32x1xf32> to vector<32x256xf32>
    %56 = arith.mulf %55, %54 : vector<32x256xf32>
    %cst_20 = arith.constant dense<0.000000e+00> : vector<256xf32>
    %57 = vector.multi_reduction <add>, %56, %cst_20 [0] : vector<32x256xf32> to vector<256xf32>
    %58 = vector.shape_cast %57 : vector<256xf32> to vector<1x256xf32>
    %59 = vector.broadcast %10 : vector<1x1xf32> to vector<1x256xf32>
    %60 = arith.addf %58, %59 : vector<1x256xf32>
    %61 = arith.mulf %54, %54 : vector<32x256xf32>
    %cst_21 = arith.constant 1.000000e+00 : f32
    %62 = vector.broadcast %cst_21 : f32 to vector<32x256xf32>
    %63 = arith.subf %62, %61 : vector<32x256xf32>
    %64 = vector.broadcast %9 : vector<32x1xf32> to vector<32x256xf32>
    %65 = arith.mulf %63, %64 : vector<32x256xf32>
    %cst_22 = arith.constant dense<0.000000e+00> : vector<32x256xf32>
    %66 = tpu.matmul %7, %65, %cst_22 {dimension_numbers = #tpu.dot_dimension_numbers<[1], [0], [0], [1], [0, 0, 1, 1], [], []>} : vector<32x32xf32>, vector<32x256xf32>, vector<32x256xf32> -> vector<32x256xf32>
    %67 = arith.mulf %50, %50 : vector<32x256xf32>
    %cst_23 = arith.constant 1.000000e+00 : f32
    %68 = vector.broadcast %cst_23 : f32 to vector<32x256xf32>
    %69 = arith.subf %68, %67 : vector<32x256xf32>
    %70 = arith.mulf %66, %69 : vector<32x256xf32>
    %cst_24 = arith.constant dense<0.000000e+00> : vector<3x256xf32>
    %71 = tpu.matmul %8, %70, %cst_24 {dimension_numbers = #tpu.dot_dimension_numbers<[1], [0], [0], [1], [0, 0, 1, 1], [], []>} : vector<3x32xf32>, vector<32x256xf32>, vector<3x256xf32> -> vector<3x256xf32>
    %72 = vector.extract_strided_slice %71 {offsets = [0, 0], sizes = [1, 256], strides = [1, 1]} : vector<3x256xf32> to vector<1x256xf32>
    %73 = vector.extract_strided_slice %71 {offsets = [0, 0], sizes = [1, 256], strides = [1, 1]} : vector<3x256xf32> to vector<1x256xf32>
    %74 = arith.mulf %72, %73 : vector<1x256xf32>
    %75 = vector.extract_strided_slice %71 {offsets = [1, 0], sizes = [1, 256], strides = [1, 1]} : vector<3x256xf32> to vector<1x256xf32>
    %76 = vector.extract_strided_slice %71 {offsets = [1, 0], sizes = [1, 256], strides = [1, 1]} : vector<3x256xf32> to vector<1x256xf32>
    %77 = arith.mulf %75, %76 : vector<1x256xf32>
    %78 = arith.addf %74, %77 : vector<1x256xf32>
    %79 = vector.extract_strided_slice %71 {offsets = [2, 0], sizes = [1, 256], strides = [1, 1]} : vector<3x256xf32> to vector<1x256xf32>
    %80 = vector.extract_strided_slice %71 {offsets = [2, 0], sizes = [1, 256], strides = [1, 1]} : vector<3x256xf32> to vector<1x256xf32>
    %81 = arith.mulf %79, %80 : vector<1x256xf32>
    %82 = arith.addf %78, %81 : vector<1x256xf32>
    %83 = arith.subf %82, %19 : vector<1x256xf32>
    %84 = arith.mulf %83, %26 : vector<1x256xf32>
    %cst_25 = arith.constant 0.000000e+00 : f32
    %85 = vector.broadcast %cst_25 : f32 to vector<1x256xf32>
    %86 = arith.subf %85, %60 : vector<1x256xf32>
    %cst_26 = arith.constant 0.000000e+00 : f32
    %87 = vector.broadcast %cst_26 : f32 to vector<1x256xf32>
    %88 = arith.maximumf %86, %87 : vector<1x256xf32>
    %cst_27 = arith.constant 2.000000e+00 : f32
    %89 = vector.broadcast %cst_27 : f32 to vector<1x256xf32>
    %90 = arith.mulf %89, %88 : vector<1x256xf32>
    %91 = arith.mulf %90, %26 : vector<1x256xf32>
    %92 = arith.subf %60, %19 : vector<1x256xf32>
    %93 = arith.mulf %92, %33 : vector<1x256xf32>
    %94 = arith.mulf %84, %84 : vector<1x256xf32>
    %95 = arith.addf %13, %94 : vector<1x256xf32>
    %96 = arith.mulf %91, %91 : vector<1x256xf32>
    %97 = arith.addf %13, %96 : vector<1x256xf32>
    %98 = arith.mulf %93, %93 : vector<1x256xf32>
    %99 = arith.addf %13, %98 : vector<1x256xf32>
    %c1_i32 = arith.constant 1 : i32
    %100 = vector.shape_cast %95 : vector<1x256xf32> to vector<2x128xf32>
    %cst_28 = arith.constant dense<0.000000e+00> : vector<128xf32>
    %101 = vector.multi_reduction <add>, %100, %cst_28 [0] : vector<2x128xf32> to vector<128xf32>
    %102 = vector.shape_cast %101 : vector<128xf32> to vector<1x128xf32>
    %103 = vector.shape_cast %97 : vector<1x256xf32> to vector<2x128xf32>
    %cst_29 = arith.constant dense<0.000000e+00> : vector<128xf32>
    %104 = vector.multi_reduction <add>, %103, %cst_29 [0] : vector<2x128xf32> to vector<128xf32>
    %105 = vector.shape_cast %104 : vector<128xf32> to vector<1x128xf32>
    %106 = vector.shape_cast %99 : vector<1x256xf32> to vector<2x128xf32>
    %cst_30 = arith.constant dense<0.000000e+00> : vector<128xf32>
    %107 = vector.multi_reduction <add>, %106, %cst_30 [0] : vector<2x128xf32> to vector<128xf32>
    %108 = vector.shape_cast %107 : vector<128xf32> to vector<1x128xf32>
    %cst_31 = arith.constant 0.000000e+00 : f32
    %109 = vector.broadcast %cst_31 : f32 to vector<5x128xf32>
    %110 = tpu.concatenate %102, %105, %108, %109 in 0 : vector<1x128xf32>, vector<1x128xf32>, vector<1x128xf32>, vector<5x128xf32> -> vector<8x128xf32>
    %c0_32 = arith.constant 0 : index
    %c0_33 = arith.constant 0 : index
    %c0_34 = arith.constant 0 : index
    %111 = vector.load %arg11[%c0_32, %c0_33, %c0_34] : memref<1x8x128xf32, #tpu.memory_space<vmem>>, vector<1x8x128xf32>
    %112 = vector.shape_cast %111 : vector<1x8x128xf32> to vector<8x128xf32>
    %113 = vector.shape_cast %110 : vector<8x128xf32> to vector<1x8x128xf32>
    tpu.vector_store %arg11[%c0_32, %c0_33, %c0_34], %113 {strides = array<i32>} : memref<1x8x128xf32, #tpu.memory_space<vmem>>, vector<1x8x128xf32>,
    return
  }
  func.func @transform_0(%arg0: i32) -> (i32, i32) {
    %c0_i32 = arith.constant 0 : i32
    %c0_i32_0 = arith.constant 0 : i32
    return %c0_i32, %arg0 : i32, i32
  }
  func.func @transform_1(%arg0: i32) -> (i32, i32) {
    %c0_i32 = arith.constant 0 : i32
    %c0_i32_0 = arith.constant 0 : i32
    return %c0_i32, %arg0 : i32, i32
  }
  func.func @transform_2(%arg0: i32) -> (i32, i32) {
    %c0_i32 = arith.constant 0 : i32
    %c0_i32_0 = arith.constant 0 : i32
    %c0_i32_1 = arith.constant 0 : i32
    return %c0_i32, %c0_i32_0 : i32, i32
  }
  func.func @transform_3(%arg0: i32) -> (i32, i32) {
    %c0_i32 = arith.constant 0 : i32
    %c0_i32_0 = arith.constant 0 : i32
    %c0_i32_1 = arith.constant 0 : i32
    return %c0_i32, %c0_i32_0 : i32, i32
  }
  func.func @transform_4(%arg0: i32) -> (i32, i32) {
    %c0_i32 = arith.constant 0 : i32
    %c0_i32_0 = arith.constant 0 : i32
    %c0_i32_1 = arith.constant 0 : i32
    return %c0_i32, %c0_i32_0 : i32, i32
  }
  func.func @transform_5(%arg0: i32) -> (i32, i32) {
    %c0_i32 = arith.constant 0 : i32
    %c0_i32_0 = arith.constant 0 : i32
    %c0_i32_1 = arith.constant 0 : i32
    return %c0_i32, %c0_i32_0 : i32, i32
  }
  func.func @transform_6(%arg0: i32) -> (i32, i32) {
    %c0_i32 = arith.constant 0 : i32
    %c0_i32_0 = arith.constant 0 : i32
    %c0_i32_1 = arith.constant 0 : i32
    return %c0_i32, %c0_i32_0 : i32, i32
  }
  func.func @transform_7(%arg0: i32) -> (i32, i32) {
    %c0_i32 = arith.constant 0 : i32
    %c0_i32_0 = arith.constant 0 : i32
    %c0_i32_1 = arith.constant 0 : i32
    return %c0_i32, %c0_i32_0 : i32, i32
  }
  func.func @transform_8(%arg0: i32) -> (i32, i32) {
    %c0_i32 = arith.constant 0 : i32
    %c0_i32_0 = arith.constant 0 : i32
    %c0_i32_1 = arith.constant 0 : i32
    return %c0_i32, %c0_i32_0 : i32, i32
  }
  func.func @transform_9(%arg0: i32) -> (i32, i32) {
    %c0_i32 = arith.constant 0 : i32
    %c0_i32_0 = arith.constant 0 : i32
    %c0_i32_1 = arith.constant 0 : i32
    return %c0_i32, %c0_i32_0 : i32, i32
  }
  func.func @transform_10(%arg0: i32) -> (i32, i32, i32) {
    %c0_i32 = arith.constant 0 : i32
    %c0_i32_0 = arith.constant 0 : i32
    %c0_i32_1 = arith.constant 0 : i32
    return %arg0, %c0_i32, %c0_i32_0 : i32, i32, i32
  }
}

</mosaic_0001>

<bundles_post_ra>
// kernel: tpu_custom_call.1
= control target key start
LH: loop header
LB: loop body
LE: loop exit
PB: predicated region body
PF: predicated region fallthrough
CT: control target
= control target key end

     0   :  { %s1763_s0 = inlined_call_operand.vmem [shape: f32[3,512], index: 0, kind: input, shape index: {}]   ;;  %s1764_s1 = inlined_call_operand.vmem [shape: f32[1,512], index: 1, kind: input, shape index: {}]   ;;  %s1765_s2 = inlined_call_operand.vmem [shape: f32[32,3], index: 2, kind: input, shape index: {}]   ;;  %s1766_s3 = inlined_call_operand.vmem [shape: f32[32,1], index: 3, kind: input, shape index: {}]   ;;  %s1767_s4 = inlined_call_operand.vmem [shape: f32[32,32], index: 4, kind: input, shape index: {}]   ;;  %s1768_s5 = inlined_call_operand.vmem [shape: f32[32,1], index: 5, kind: input, shape index: {}]   ;;  %s1769_s6 = inlined_call_operand.vmem [shape: f32[32,32], index: 6, kind: input, shape index: {}]   ;;  %s1770_s7 = inlined_call_operand.vmem [shape: f32[3,32], index: 7, kind: input, shape index: {}]   ;;  %s1771_s8 = inlined_call_operand.vmem [shape: f32[32,1], index: 8, kind: input, shape index: {}]   ;;  %s1772_s9 = inlined_call_operand.<no memory space> [shape: f32[1,1], index: 9, kind: input, shape index: {}]   ;;  %s1773_s10 = inlined_call_operand.hbm [shape: f32[2,8,128], index: 10, kind: output, shape index: {}]  }
   0x1   :  { %v15_v0 = vstv %s1772_s9 }
   0x2   :  { %16 = vst [vmem:[#allocation2] sm:$0x1] %v15_v0 }
   0x3   :  { %17 = vsyncpa [#allocation4], 0 }
   0x4   :  { %19 = vsyncpa [#allocation4 + $0x1], 0  ;;  %s1464_s15 = smov 0   ;;  %s1466_s16 = smov 0  }
   0x5   :  { %s1468_s17 = smov 0   ;;  %s1470_s18 = smov 0  }
   0x6 LB: > { %s1485_s9 = sadd.s32 4294967295, %s1398_s18   ;;  %s1224_s19 = sadd.s32 4294967294, %s1398_s18   ;;  %s1398_s18 = sphi %s1470_s18, %s1779_s18   ;;  %s1394_s17 = sphi %s1468_s17, %s1778_s17   ;;  %s1390_s16 = sphi %s1466_s16, %s1777_s16   ;;  %s1386_s15 = sphi %s1464_s15, %s1776_s15  }
   0x7   : > { %s1489_s20 = sadd.s32 1, %s1398_s18   ;;  %s252_s21 = sadd.s32 1, %s1394_s17 }
   0x8   : > { %s249_s22 = ssub.s32 %s1398_s18, %s1489_s20  ;;  %p262_p0 = scmp.ne.s32.totalorder %s1394_s17, %s1390_s16 }
   0x9   : > { %p250_p1 = scmp.eq.s32.totalorder %s249_s22, 0  ;;  %p263_p2 = scmp.eq.s32.totalorder %s1485_s9, 1 }
   0xa   : > { %p268_p3 = scmp.ne.s32.totalorder %s1390_s16, %s1386_s15  ;;  %p269_p4 = scmp.eq.s32.totalorder %s1224_s19, 1 }
   0xb   : > { %s1500_s23 = scalar_select %p250_p1, %s1394_s17, %s252_s21  }
   0xc   : > { %p1502_p5 = por %p263_p2, %p262_p0  ;;  %p1506_p6 = por %p269_p4, %p268_p3 }
   0xd   : > { %p1227_p7 = scmp.ge.s32.totalorder %s1398_s18, 1  ;;  %p328_p8 = scmp.lt.s32.totalorder %s1398_s18, 3 }
   0xf   : > { %p329_p9 = pnand %p1227_p7, %p328_p8 }
  0x10   : > { %s1229_s14 = sshll.u32 (!%p329_p9), %s1485_s9, 1  ;;  %s1232_s21 = sshll.u32 (!%p329_p9), %s1485_s9, 8 }
  0x11   : > { %332 = sbr.rel (%p329_p9) target bundleno = 907 (0x38b), region = 60  ;;  %p371_p10 = scmp.lt.s32.totalorder (!%p329_p9), %s1229_s14, 3 }
  0x16   : > { %v384_v1 = vld [vmem:[%s1765_s2 + $0x18] sm:$0xff]  ;;  %v383_v2 = vld [vmem:[%s1765_s2 + $0x10] sm:$0xff]  ;;  %v1400_v3 = vmov 1   ;;  %v1401_v4 = vmov 0   ;;  %v382_v5 = vld [vmem:[%s1765_s2 + $0x8] sm:$0xff]  ;;  %v1402_v6 = vmov 2   ;;  %v408_v24 = vlaneseq }
  0x17   : > { %1294 = vset.pattern.permute.xlu0 %v1400_v3  ;;  %1295 = vset.pattern.permute.xlu1 %v1401_v4  ;;  %v381_v7 = vld [vmem:[%s1765_s2] sm:$0xff]  ;;  %v387_v8 = vld [vmem:[%s1766_s3 + $0x10] sm:$0xff]  ;;  %v396_v9 = vld [vmem:[%s1768_s5 + $0x18] sm:$0xff]  ;;  %v1403_v21 = vmov 0.0   ;;  %s1781_s14 = smov (!%p371_p10, %s1229_s14), 3  ;;  %vm636_vm0 = vcmask 261120  }
  0x18   : > { %493 = vperm.xlu0 %1294, %v384_v1   ;;  %445 = vperm.xlu1 %1295, %v383_v2   ;;  %v394_v10 = vld [vmem:[%s1768_s5 + $0x8] sm:$0xff]  ;;  %v388_v11 = vld [vmem:[%s1766_s3 + $0x18] sm:$0xff]  ;;  %v406_v15 = vld [vmem:[#allocation2] sm:$0x1]  ;;  %s1230_s19 = sshll.u32 %s1781_s14, 2  ;;  %v1567_v26 = vshrl.u32 %v408_v24, 7  ;;  %s379_s27 = scalar_lea.vmem %s1764_s1, %s1781_s14 }
  0x19   : > { %v405_v12 = vld [vmem:[%s1771_s8 + $0x18] sm:$0xff]  ;;  %v403_v13 = vld [vmem:[%s1771_s8 + $0x8] sm:$0xff]  ;;  %v385_v16 = vld [vmem:[%s1766_s3] sm:$0xff]  ;;  %713 = vmatprep.mubr.f32.mxu0 %v1403_v21  ;;  %903 = vmatprep.mubr.f32.mxu1 %v1403_v21  ;;  %s374_s26 = scalar_lea.vmem %s1763_s0, %s1230_s19  ;;  %vm1092_vm9 = vcmask 1041408   ;;  %vm1136_vm10 = vcmask 1040384   ;;  %s1247_s14 = sshll.u32 %s1485_s9, 7 }
  0x1a   : > { %v386_v14 = vld [vmem:[%s1766_s3 + $0x8] sm:$0xff]  ;;  %v395_v17 = vld [vmem:[%s1768_s5 + $0x10] sm:$0xff]  ;;  %v393_v18 = vld [vmem:[%s1768_s5] sm:$0xff]  ;;  %v502_v28 = vsub.s32 5, %v1567_v26  ;;  %v1574_v30 = vsub.s32 0, %v1567_v26  ;;  %v460_v31 = vsub.s32 4, %v1567_v26  ;;  %s1728_s12 = scalar_lea.hbm %s1773_s10, %s1247_s14 }
  0x1b   : > { %v404_v19 = vld [vmem:[%s1771_s8 + $0x10] sm:$0xff]  ;;  %v402_v20 = vld [vmem:[%s1771_s8] sm:$0xff]  ;;  %v1578_v32 = vsub.s32 1, %v1567_v26  ;;  %v552_v36 = vsub.s32 6, %v1567_v26  ;;  %v548_v40 = vsub.s32 2, %v1567_v26  ;;  %vm1139_vm11 = vcmask 1042432  }
  0x1c   : > { %1301 = vset.pattern.permute.xlu0 %v1402_v6  ;;  %1296 = vset.pattern.permute.xlu1 %v1400_v3  ;;  %v411_v33 = vld [vmem:[%s374_s26] sm:$0x77]  ;;  %s367_s26 = sand.u32 1, %s1390_s16   ;;  %s1405_s9 = smov [#allocation3]  }
  0x1d   : > { %489 = vperm.xlu1 %1296, %v383_v2   ;;  %535 = vperm.xlu0 %1301, %v382_v5   ;;  %v503_v35 = vrot.slane %v411_v33, %v502_v28  ;;  %v457_v37 = vrot.slane %v411_v33, %v1574_v30  ;;  %v461_v38 = vrot.slane %v411_v33, %v460_v31  ;;  %s1143_s13 = scalar_lea.sflag [#allocation4], %s367_s26 }
  0x1e   : > { %v499_v39 = vrot.slane %v411_v33, %v1578_v32  ;;  %v553_v43 = vrot.slane %v411_v33, %v552_v36  ;;  %v549_v47 = vrot.slane %v411_v33, %v548_v40 }
  0x1f   : > { %v513_v42 = vrot.slane %v503_v35, %v1578_v32  ;;  %v467_v44 = vrot.slane %v457_v37, %v1574_v30  ;;  %v471_v45 = vrot.slane %v461_v38, %v1574_v30 }
  0x20   : > { %v509_v46 = vrot.slane %v499_v39, %v1578_v32  ;;  %v563_v55 = vrot.slane %v553_v43, %v548_v40  ;;  %v559_v57 = vrot.slane %v549_v47, %v548_v40 }
  0x21   : > { %1297 = vset.pattern.permute.xlu1 %v1402_v6  ;;  %1302 = vset.pattern.permute.xlu0 %v1401_v4 }
  0x22   : > { %543 = vperm.xlu1 %1297, %v384_v1   ;;  %450 = vperm.xlu0 %1302, %v384_v1  }
  0x26   : > { %1298 = vset.pattern.permute.xlu1 %v1400_v3  ;;  %440 = vperm.xlu0 %1302, %v382_v5  }
  0x27   : > { %485 = vperm.xlu1 %1298, %v382_v5  }
  0x2a   : > { %435 = vperm.xlu0 %1302, %v381_v7  }
  0x2b   : > { %1299 = vset.pattern.permute.xlu1 %v1402_v6 }
  0x2c   : > { %539 = vperm.xlu1 %1299, %v383_v2  }
  0x2e   : > { %592 = vperm.xlu0 %1302, %v387_v8  }
  0x30   : > { %1300 = vset.pattern.permute.xlu1 %v1400_v3 }
  0x31   : > { %481 = vperm.xlu1 %1300, %v381_v7  }
  0x32   : > { %633 = vperm.xlu0 %1302, %v396_v9  }
  0x35   : > { %1303 = vset.pattern.permute.xlu1 %v1401_v4 }
  0x36   : > { %623 = vperm.xlu0 %1302, %v394_v10   ;;  %597 = vperm.xlu1 %1303, %v388_v11  }
  0x3a   : > { %763 = vperm.xlu0 %1302, %v405_v12   ;;  %1304 = vset.pattern.permute.xlu1 %v1402_v6 }
  0x3b   : > { %531 = vperm.xlu1 %1304, %v381_v7  }
  0x3e   : > { %753 = vperm.xlu0 %1302, %v403_v13  }
  0x3f   : > { %1305 = vset.pattern.permute.xlu1 %v1401_v4 }
  0x40   : > { %587 = vperm.xlu1 %1305, %v386_v14  }
  0x42   : > { %794 = vperm.xlu0 %1302, %v406_v15  }
  0x44   : > { %582 = vperm.xlu1 %1305, %v385_v16  }
  0x48   : > { %628 = vperm.xlu1 %1305, %v395_v17  }
  0x4c   : > { %618 = vperm.xlu1 %1305, %v393_v18  }
  0x50   : > { %758 = vperm.xlu1 %1305, %v404_v19  }
  0x54   : > { %748 = vperm.xlu1 %1305, %v402_v20  }
  0x93   : > { %v446_v22 = vpop.permute.xlu1 %445  ;;  %v494_v23 = vpop.permute.xlu0 %493 }
  0x94   : > { %v520_v50 = vmul.f32 %v509_v46, %v494_v23  ;;  %v521_v51 = vmul.f32 %v513_v42, %v494_v23  ;;  %v477_v58 = vmul.f32 %v471_v45, %v446_v22  ;;  %v476_v60 = vmul.f32 %v467_v44, %v446_v22 }
  0x98   : > { %v490_v25 = vpop.permute.xlu1 %489  ;;  %v536_v27 = vpop.permute.xlu0 %535 }
  0x99   : > { %v519_v54 = vmul.f32 %v513_v42, %v490_v25  ;;  %v518_v56 = vmul.f32 %v509_v46, %v490_v25  ;;  %v566_v20 = vmul.f32 %v559_v57, %v536_v27  ;;  %v567_v22 = vmul.f32 %v563_v55, %v536_v27 }
  0x9b   : > { %v527_v2 = vadd.f32 %v519_v54, %v477_v58  ;;  %v526_v3 = vadd.f32 %v518_v56, %v476_v60  ;;  %v389_v56 = vld [vmem:[%s1767_s4] sm:$0xff]  ;;  %v391_v58 = vld [vmem:[%s1767_s4 + $0x10] sm:$0xff] }
  0x9d   : > { %v544_v29 = vpop.permute.xlu1 %543  ;;  %v451_v34 = vpop.permute.xlu0 %450 }
  0x9e   : > { %v478_v52 = vmul.f32 %v467_v44, %v451_v34  ;;  %v479_v53 = vmul.f32 %v471_v45, %v451_v34  ;;  %v570_v4 = vmul.f32 %v559_v57, %v544_v29  ;;  %v571_v5 = vmul.f32 %v563_v55, %v544_v29 }
  0xa0   : > { %v528_v61 = vadd.f32 %v520_v50, %v478_v52  ;;  %v529_v62 = vadd.f32 %v521_v51, %v479_v53 }
  0xa1   : > { %v441_v48 = vpop.permute.xlu0 %440 }
  0xa2   : > { %v486_v41 = vpop.permute.xlu1 %485  ;;  %v578_v8 = vadd.f32 %v570_v4, %v528_v61  ;;  %v579_v9 = vadd.f32 %v571_v5, %v529_v62  ;;  %v474_v10 = vmul.f32 %v467_v44, %v441_v48  ;;  %v475_v11 = vmul.f32 %v471_v45, %v441_v48 }
  0xa3   : > { %v516_v13 = vmul.f32 %v509_v46, %v486_v41  ;;  %v517_v14 = vmul.f32 %v513_v42, %v486_v41 }
  0xa5   : > { %v436_v63 = vpop.permute.xlu0 %435  ;;  %v524_v23 = vadd.f32 %v516_v13, %v474_v10  ;;  %v525_v25 = vadd.f32 %v517_v14, %v475_v11 }
  0xa6   : > { %v472_v29 = vmul.f32 %v467_v44, %v436_v63  ;;  %v473_v31 = vmul.f32 %v471_v45, %v436_v63 }
  0xa7   : > { %v540_v49 = vpop.permute.xlu1 %539  ;;  %v574_v37 = vadd.f32 %v566_v20, %v524_v23  ;;  %v575_v38 = vadd.f32 %v567_v22, %v525_v25 }
  0xa8   : > { %v569_v59 = vmul.f32 %v563_v55, %v540_v49  ;;  %v568_v0 = vmul.f32 %v559_v57, %v540_v49 }
  0xa9   : > { %v593_v15 = vpop.permute.xlu0 %592 }
  0xaa   : > { %v577_v6 = vadd.f32 %v569_v59, %v527_v2  ;;  %v576_v7 = vadd.f32 %v568_v0, %v526_v3  ;;  %v392_v59 = vld [vmem:[%s1767_s4 + $0x18] sm:$0xff] }
  0xac   : > { %v482_v1 = vpop.permute.xlu1 %481  ;;  %v605_v18 = vadd.f32 %v593_v15, %v577_v6  ;;  %v604_v19 = vadd.f32 %v593_v15, %v576_v7 }
  0xad   : > { %v514_v33 = vmul.f32 %v509_v46, %v482_v1  ;;  %v515_v34 = vmul.f32 %v513_v42, %v482_v1  ;;  %v634_v61 = vpop.permute.xlu0 %633 }
  0xaf   : > { %v522_v40 = vadd.f32 %v514_v33, %v472_v29  ;;  %v523_v41 = vadd.f32 %v515_v34, %v473_v31 }
  0xb1   : > { %v598_v12 = vpop.permute.xlu1 %597  ;;  %v624_v3 = vpop.permute.xlu0 %623 }
  0xb2   : > { %v606_v16 = vadd.f32 %v598_v12, %v578_v8  ;;  %v607_v17 = vadd.f32 %v598_v12, %v579_v9 }
  0xb4   : > { %1306 = vtanh.f32 %v606_v16 }
  0xb5   : > { %1308 = vtanh.f32 %v607_v17  ;;  %v764_v15 = vpop.permute.xlu0 %763 }
  0xb6   : > { %v532_v28 = vpop.permute.xlu1 %531  ;;  %1310 = vtanh.f32 %v605_v18 }
  0xb7   : > { %1312 = vtanh.f32 %v604_v19  ;;  %v564_v35 = vmul.f32 %v559_v57, %v532_v28  ;;  %v565_v36 = vmul.f32 %v563_v55, %v532_v28  ;;  %v390_v57 = vld [vmem:[%s1767_s4 + $0x8] sm:$0xff] }
  0xb9   : > { %v572_v27 = vadd.f32 %v564_v35, %v522_v40  ;;  %v573_v48 = vadd.f32 %v565_v36, %v523_v41  ;;  %v754_v28 = vpop.permute.xlu0 %753 }
  0xbb   : > { %v588_v39 = vpop.permute.xlu1 %587 }
  0xbc   : > { %v602_v43 = vadd.f32 %v588_v39, %v574_v37  ;;  %v603_v47 = vadd.f32 %v588_v39, %v575_v38 }
  0xbe   : > { %1314 = vtanh.f32 %v602_v43 }
  0xbf   : > { %1316 = vtanh.f32 %v603_v47  ;;  %v583_v49 = vpop.permute.xlu1 %582 }
  0xc0   : > { %v600_v44 = vadd.f32 %v583_v49, %v572_v27  ;;  %v601_v50 = vadd.f32 %v583_v49, %v573_v48 }
  0xc1   : > { %v1588_v45 = vpop.eup %1306 }
  0xc2   : > { %v1590_v46 = vpop.eup %1308  ;;  %1318 = vtanh.f32 %v600_v44 }
  0xc3   : > { %1320 = vtanh.f32 %v601_v50  ;;  %673 = vmatprep.subr.mxu0 %v1590_v46  ;;  %v1593_v42 = vpop.eup %1310  ;;  %v629_v60 = vpop.permute.xlu1 %628  ;;  %v409_v50 = vand.u32 127, %v408_v24 }
  0xc4   : > { %674 = vmatpush1.msra.mxu0 %v1588_v45  ;;  %v1596_v51 = vpop.eup %1312 }
  0xc5   : > { %675 = vmatprep.subr.mxu0 %v1593_v42 }
  0xc6   : > { %676 = vmatpush1.msra.mxu0 %v1596_v51 }
  0xc7   : > { %v619_v62 = vpop.permute.xlu1 %618 }
  0xcb   : > { %v1600_v52 = vpop.eup %1314  ;;  %v1632_v10 = vpop.permute.xlu1 %758 }
  0xcc   : > { %v1602_v53 = vpop.eup %1316 }
  0xcd   : > { %677 = vmatprep.subr.mxu0 %v1602_v53 }
  0xce   : > { %678 = vmatpush1.msra.mxu0 %v1600_v52 }
  0xcf   : > { %v1606_v54 = vpop.eup %1318  ;;  %v1634_v19 = vpop.permute.xlu1 %748 }
  0xd0   : > { %v1608_v55 = vpop.eup %1320 }
  0xd1   : > { %679 = vmatprep.subr.mxu0 %v1608_v55 }
  0xd2   : > { %680 = vmatpush1.msra.mxu0 %v1606_v54 }
  0xd3   : > { %1237 = vmatmul.mubr.msk.f32.vlgmr.msra.gmra.mxu0 %vm636_vm0, %v389_v56 }
  0xd4   : > { %719 = vmatprep.mubr.f32.mxu0 %v1403_v21 }
  0xd7   : > { %1238 = vmatmul.mubr.msk.f32.gmra.mxu0 %vm636_vm0, %v390_v57 }
  0xd8   : > { %725 = vmatprep.mubr.f32.mxu0 %v1403_v21 }
  0xdb   : > { %1239 = vmatmul.mubr.msk.f32.gmra.mxu0 %vm636_vm0, %v391_v58 }
  0xdc   : > { %731 = vmatprep.mubr.f32.mxu0 %v1403_v21 }
  0xdf   : > { %1240 = vmatmul.mubr.msk.f32.gmra.mxu0 %vm636_vm0, %v392_v59 }
  0xe0   : > { %1019 = vmatprep.mubr.f32.mxu0 %v1403_v21 }
 0x193   : > { %v715_v63 = vpop.f32.mrf.mxu0 }
 0x194   : > { %v716_v0 = vadd.f32 %v715_v63, %v619_v62  ;;  %v414_v63 = vstv %s1232_s21  ;;  %s1342_s21 = sshll.u32 %s1405_s9, 4  ;;  %s1343_s21 = int_to_ptr.vmem [resolvable:$false] %s1342_s21 }
 0x195   : > { %v717_v1 = vpop.f32.mrf.mxu0  ;;  %s1344_s22 = scalar_lea.vmem %s1343_s21, 256 }
 0x196   : > { %1322 = vtanh.f32 %v716_v0  ;;  %v718_v2 = vadd.f32 %v717_v1, %v619_v62 }
 0x197   : > { %v721_v4 = vpop.f32.mrf.mxu0 }
 0x198   : > { %1324 = vtanh.f32 %v718_v2  ;;  %v722_v5 = vadd.f32 %v721_v4, %v624_v3 }
 0x199   : > { %v723_v6 = vpop.f32.mrf.mxu0 }
 0x19a   : > { %1326 = vtanh.f32 %v722_v5  ;;  %v724_v7 = vadd.f32 %v723_v6, %v624_v3  ;;  %v410_v6 = vadd.s32 128, %v409_v50 }
 0x19b   : > { %v727_v8 = vpop.f32.mrf.mxu0 }
 0x19c   : > { %1328 = vtanh.f32 %v724_v7  ;;  %v728_v9 = vadd.f32 %v727_v8, %v629_v60 }
 0x19d   : > { %v729_v11 = vpop.f32.mrf.mxu0 }
 0x19e   : > { %1330 = vtanh.f32 %v728_v9  ;;  %v730_v12 = vadd.f32 %v729_v11, %v629_v60 }
 0x19f   : > { %v733_v13 = vpop.f32.mrf.mxu0 }
 0x1a0   : > { %1332 = vtanh.f32 %v730_v12  ;;  %v734_v14 = vadd.f32 %v733_v13, %v634_v61  ;;  %v415_v13 = vadd.s32 %v414_v63, %v409_v50 }
 0x1a1   : > { %v735_v16 = vpop.f32.mrf.mxu0 }
 0x1a2   : > { %1334 = vtanh.f32 %v734_v14  ;;  %v736_v17 = vadd.f32 %v735_v16, %v634_v61  ;;  %vm423_vm1 = vcmp.ge.s32.totalorder %v415_v13, 500  ;;  %vm425_vm2 = vcmp.lt.s32.totalorder %v415_v13, 510 }
 0x1a3   : > { %v1323_v18 = vpop.eup %1322  ;;  %vm427_vm5 = vmand %vm423_vm1, %vm425_vm2  ;;  %vm417_vm7 = vcmp.lt.s32.totalorder %v415_v13, 500 }
 0x1a4   : > { %v766_v20 = vmul.f32 %v1323_v18, %v1634_v19  ;;  %1336 = vtanh.f32 %v736_v17  ;;  %v803_v5 = vmul.f32 %v1323_v18, %v1323_v18 }
 0x1a5   : > { %v1325_v22 = vpop.eup %1324 }
 0x1a6   : > { %v767_v23 = vmul.f32 %v1325_v22, %v1634_v19  ;;  %v804_v62 = vmul.f32 %v1325_v22, %v1325_v22  ;;  %v811_v22 = vsub.f32 1.0, %v803_v5  ;;  %v400_v5 = vld [vmem:[%s1769_s6 + $0x18] sm:$0xff] }
 0x1a7   : > { %v1327_v25 = vpop.eup %1326 }
 0x1a8   : > { %v768_v29 = vmul.f32 %v1327_v25, %v754_v28  ;;  %v805_v61 = vmul.f32 %v1327_v25, %v1327_v25  ;;  %v812_v17 = vsub.f32 1.0, %v804_v62 }
 0x1a9   : > { %v1329_v31 = vpop.eup %1328 }
 0x1aa   : > { %v774_v33 = vadd.f32 %v768_v29, %v766_v20  ;;  %v769_v34 = vmul.f32 %v1329_v31, %v754_v28  ;;  %v806_v59 = vmul.f32 %v1329_v31, %v1329_v31  ;;  %v813_v12 = vsub.f32 1.0, %v805_v61  ;;  %v795_v31 = vpop.permute.xlu0 %794 }
 0x1ab   : > { %v1331_v35 = vpop.eup %1330 }
 0x1ac   : > { %v783_v36 = vadd.f32 %v769_v34, %v767_v23  ;;  %v770_v37 = vmul.f32 %v1331_v35, %v1632_v10  ;;  %v807_v44 = vmul.f32 %v1331_v35, %v1331_v35  ;;  %v814_v24 = vsub.f32 1.0, %v806_v59  ;;  %v412_v34 = vld [vmem:[%s379_s27] sm:$0x3]  ;;  %v399_v59 = vld [vmem:[%s1769_s6 + $0x10] sm:$0xff]  ;;  %s1228_s27 = sshll.u32 %s367_s26, 3 }
 0x1ad   : > { %v1333_v38 = vpop.eup %1332  ;;  %v416_v23 = vadd.s32 %v414_v63, %v410_v6  ;;  %v820_v35 = vmul.f32 %v812_v17, %v1634_v19  ;;  %s369_s28 = scalar_lea.vmem [#allocation3], %s1228_s27 }
 0x1ae   : > { %v775_v39 = vadd.f32 %v774_v33, %v770_v37  ;;  %v771_v40 = vmul.f32 %v1333_v38, %v1632_v10  ;;  %v808_v48 = vmul.f32 %v1333_v38, %v1333_v38  ;;  %v815_v4 = vsub.f32 1.0, %v807_v44  ;;  %v397_v38 = vld [vmem:[%s1769_s6] sm:$0xff]  ;;  %s1156_s29 = sshll.u32 %s369_s28, 4  ;;  %s1157_s29 = int_to_ptr.vmem [resolvable:$true] %s1156_s29 }
 0x1af   : > { %v1335_v41 = vpop.eup %1334  ;;  %v822_v25 = vmul.f32 %v814_v24, %v754_v28  ;;  %v821_v33 = vmul.f32 %v813_v12, %v754_v28  ;;  %vm424_vm3 = vcmp.ge.s32.totalorder %v416_v23, 500  ;;  %vm426_vm4 = vcmp.lt.s32.totalorder %v416_v23, 510  ;;  %s1338_s19 = scalar_lea.vmem %s1157_s29, 128  ;;  %p1345_p0 = scmp.lt.s32.totalorder %s1157_s29, %s1343_s21 }
 0x1b0   : > { %v784_v43 = vadd.f32 %v783_v36, %v771_v40  ;;  %v772_v47 = vmul.f32 %v1335_v41, %v764_v15  ;;  %v809_v27 = vmul.f32 %v1335_v41, %v1335_v41  ;;  %v816_v3 = vsub.f32 1.0, %v808_v48  ;;  %vm428_vm6 = vmand %vm424_vm3, %vm426_vm4  ;;  %p1339_p11 = scmp.ne.s32.totalorder %s1157_s29, %s1338_s19  ;;  %p1346_p1 = scmp.lt.s32.totalorder %s1344_s22, %s1338_s19 }
 0x1b1   : > { %v1337_v49 = vpop.eup %1336  ;;  %v823_v18 = vmul.f32 %v815_v4, %v1632_v10  ;;  %v1655_v40 = vrot.slane %v412_v34, %v1574_v30  ;;  %v1235_v48 = vsel %vm427_vm5, 1.0, %v1403_v21  ;;  %vm418_vm8 = vcmp.lt.s32.totalorder %v416_v23, 500 }
 0x1b2   : > { %v776_v56 = vadd.f32 %v775_v39, %v772_v47  ;;  %v773_v57 = vmul.f32 %v1337_v49, %v764_v15  ;;  %v810_v58 = vmul.f32 %v1337_v49, %v1337_v49  ;;  %v817_v60 = vsub.f32 1.0, %v809_v27  ;;  %v398_v27 = vld [vmem:[%s1769_s6 + $0x8] sm:$0xff]  ;;  %p1340_p12 = pnand %p1339_p11, %p1502_p5  ;;  %p1347_p2 = por %p1346_p1, %p1345_p0 }
 0x1b3   : > { %v824_v16 = vmul.f32 %v816_v3, %v1632_v10  ;;  %v819_v10 = vmul.f32 %v811_v22, %v1634_v19  ;;  %v800_v39 = vrot.slane %v795_v31, %v1574_v30  ;;  %v1659_v47 = vrot.slane %v412_v34, %v1578_v32 }
 0x1b4   : > { %v777_v0 = vrot.slane %v776_v56, 4  ;;  %v785_v1 = vadd.f32 %v784_v43, %v773_v57  ;;  %v818_v2 = vsub.f32 1.0, %v810_v58  ;;  %v825_v11 = vmul.f32 %v817_v60, %v764_v15  ;;  %p1341_p13 = pneg %p1340_p12 }
 0x1b5   : > { %v1236_v50 = vsel %vm428_vm6, 1.0, %v1403_v21  ;;  %v1675_v60 = vsel %vm417_vm7, 1.0, %v1403_v21  ;;  %v932_v22 = vmul.f32 %v1596_v51, %v1596_v51 }
 0x1b6   : > { %v778_v7 = vadd.f32 %v777_v0, %v776_v56  ;;  %v786_v8 = vrot.slane %v785_v1, 4  ;;  %v826_v9 = vmul.f32 %v818_v2, %v764_v15  ;;  %v1678_v0 = vsel %vm418_vm8, 1.0, %v1403_v21  ;;  %p1348_p3 = pnand %p1347_p2, %p1341_p13 }
 0x1b8   : > { %v787_v14 = vadd.f32 %v786_v8, %v785_v1  ;;  %863 = vmatprep.subr.mxu1 %v826_v9  ;;  %v779_v20 = vrot.slane %v778_v7, 2 }
 0x1b9   : > { %864 = vmatpush1.msra.mxu1 %v825_v11 }
 0x1ba   : > { %865 = vmatprep.subr.mxu1 %v824_v16  ;;  %v780_v15 = vadd.f32 %v779_v20, %v778_v7  ;;  %v788_v29 = vrot.slane %v787_v14, 2  ;;  %v934_v20 = vmul.f32 %v1588_v45, %v1588_v45 }
 0x1bb   : > { %866 = vmatpush1.msra.mxu1 %v823_v18  ;;  %v933_v18 = vmul.f32 %v1593_v42, %v1593_v42  ;;  %v928_v42 = vmul.f32 %v1606_v54, %v1606_v54  ;;  %v401_v54 = vld [vmem:[%s1770_s7] sm:$0x7] }
 0x1bc   : > { %867 = vmatprep.subr.mxu1 %v822_v25  ;;  %v781_v36 = vrot.slane %v780_v15, 1  ;;  %v789_v37 = vadd.f32 %v788_v29, %v787_v14  ;;  %v931_v25 = vmul.f32 %v1602_v53, %v1602_v53  ;;  %v930_v29 = vmul.f32 %v1600_v52, %v1600_v52 }
 0x1bd   : > { %868 = vmatpush1.msra.mxu1 %v821_v33  ;;  %v942_v31 = vsub.f32 1.0, %v934_v20  ;;  %v929_v33 = vmul.f32 %v1608_v55, %v1608_v55  ;;  %v941_v45 = vsub.f32 1.0, %v933_v18 }
 0x1be   : > { %869 = vmatprep.subr.mxu1 %v820_v35  ;;  %v782_v28 = vadd.f32 %v781_v36, %v780_v15  ;;  %v790_v41 = vrot.slane %v789_v37, 1  ;;  %v940_v35 = vsub.f32 1.0, %v932_v22  ;;  %v939_v36 = vsub.f32 1.0, %v931_v25 }
 0x1bf   : > { %870 = vmatpush1.msra.mxu1 %v819_v10  ;;  %v938_v53 = vsub.f32 1.0, %v930_v29 }
 0x1c0   : > { %1241 = vmatmul.mubr.msk.f32.vlgmr.msra.gmra.mxu1 %vm636_vm0, %v397_v38  ;;  %v801_v43 = vadd.f32 %v800_v39, %v782_v28  ;;  %v791_v19 = vadd.f32 %v790_v41, %v789_v37  ;;  %v937_v38 = vsub.f32 1.0, %v929_v33 }
 0x1c1   : > { %909 = vmatprep.mubr.f32.mxu1 %v1403_v21 }
 0x1c2   : > { %v1057_v30 = vsub.f32 0.0, %v801_v43  ;;  %v1065_v49 = vsub.f32 %v801_v43, %v1655_v40  ;;  %v802_v44 = vadd.f32 %v800_v39, %v791_v19  ;;  %v936_v39 = vsub.f32 1.0, %v928_v42 }
 0x1c3   : > { %v1404_v43 = vmov 1935823168  }
 0x1c4   : > { %1242 = vmatmul.mubr.msk.f32.gmra.mxu1 %vm636_vm0, %v398_v27  ;;  %v1059_v32 = vmax.f32 %v1057_v30, 0.0  ;;  %v1067_v56 = vmul.f32 %v1235_v48, %v1065_v49  ;;  %v1058_v57 = vsub.f32 0.0, %v802_v44  ;;  %v1066_v58 = vsub.f32 %v802_v44, %v1659_v47 }
 0x1c5   : > { %915 = vmatprep.mubr.f32.mxu1 %v1403_v21  ;;  %v1086_v19 = vunpack.c.l.s4 %v1404_v43 }
 0x1c6   : > { %v1061_v61 = vmul.f32 2.0, %v1059_v32  ;;  %v1060_v62 = vmax.f32 %v1058_v57, 0.0  ;;  %v1068_v63 = vmul.f32 %v1236_v50, %v1066_v58  ;;  %v1682_v2 = vmul.f32 %v1067_v56, %v1067_v56 }
 0x1c7   : > { %v1087_v27 = vunpack.c.0.s8 %v1086_v19 }
 0x1c8   : > { %1243 = vmatmul.mubr.msk.f32.gmra.mxu1 %vm636_vm0, %v399_v59  ;;  %v1063_v1 = vmul.f32 %v1675_v60, %v1061_v61  ;;  %v1062_v3 = vmul.f32 2.0, %v1060_v62  ;;  %v1684_v4 = vmul.f32 %v1068_v63, %v1068_v63 }
 0x1c9   : > { %921 = vmatprep.mubr.f32.mxu1 %v1403_v21  ;;  %v935_v21 = vmul.f32 %v1590_v46, %v1590_v46  ;;  %v1090_v44 = vsub.s32 %v1087_v27, %v1567_v26 }
 0x1ca   : > { %v1064_v6 = vmul.f32 %v1678_v0, %v1062_v3  ;;  %v1120_v7 = vcombine.low %v1682_v2, %v1684_v4  ;;  %v1073_v8 = vmul.f32 %v1063_v1, %v1063_v1 }
 0x1cb   : > { %v943_v15 = vsub.f32 1.0, %v935_v21 }
 0x1cc   : > { %1244 = vmatmul.mubr.msk.f32.gmra.mxu1 %vm636_vm0, %v400_v5  ;;  %v1074_v9 = vmul.f32 %v1064_v6, %v1064_v6  ;;  %v1128_v61 = vrot.slane %v1120_v7, %v1090_v44 }
 0x1ce   : > { %v1102_v24 = vcombine.low %v1073_v8, %v1074_v9  ;;  %v1129_v5 = vsel %vm1092_vm9, %v1128_v61, 0.0 }
 0x1cf   : > { %v1130_v7 = vrot.slane %v1129_v5, 4 }
 0x1d0   : > { %v1110_v59 = vrot.slane %v1102_v24, %v1090_v44 }
 0x1d2   : > { %v1111_v4 = vsel %vm1092_vm9, %v1110_v59, 0.0 }
 0x1d3   : > { %v1112_v8 = vrot.slane %v1111_v4, 4 }
 0x280   : > { %v905_v11 = vpop.f32.mrf.mxu1 }
 0x281   : > { %v944_v41 = vmul.f32 %v936_v39, %v905_v11 }
 0x282   : > { %v907_v12 = vpop.f32.mrf.mxu1 }
 0x283   : > { %v945_v55 = vmul.f32 %v937_v38, %v907_v12  ;;  %v1113_v12 = vadd.f32 %v1112_v8, %v1111_v4 }
 0x284   : > { %v911_v13 = vpop.f32.mrf.mxu1 }
 0x285   : > { %v946_v28 = vmul.f32 %v938_v53, %v911_v13 }
 0x286   : > { %v913_v14 = vpop.f32.mrf.mxu1 }
 0x287   : > { %v947_v52 = vmul.f32 %v939_v36, %v913_v14  ;;  %v1131_v14 = vadd.f32 %v1130_v7, %v1129_v5 }
 0x288   : > { %v917_v16 = vpop.f32.mrf.mxu1 }
 0x289   : > { %v948_v10 = vmul.f32 %v940_v35, %v917_v16  ;;  %v1114_v16 = vrot.slane %v1113_v12, 2 }
 0x28a   : > { %v919_v17 = vpop.f32.mrf.mxu1 }
 0x28b   : > { %v949_v37 = vmul.f32 %v941_v45, %v919_v17  ;;  %v1132_v17 = vrot.slane %v1131_v14, 2  ;;  %v1115_v18 = vadd.f32 %v1114_v16, %v1113_v12 }
 0x28c   : > { %v923_v23 = vpop.f32.mrf.mxu1 }
 0x28d   : > { %v950_v51 = vmul.f32 %v942_v31, %v923_v23  ;;  %v1116_v23 = vrot.slane %v1115_v18, 1 }
 0x28e   : > { %v925_v46 = vpop.f32.mrf.mxu1 }
 0x28f   : > { %v951_v34 = vmul.f32 %v943_v15, %v925_v46  ;;  %v1117_v31 = vadd.f32 %v1116_v23, %v1115_v18 }
 0x291   : > { %979 = vmatprep.subr.mxu0 %v951_v34 }
 0x292   : > { %980 = vmatpush1.msra.mxu0 %v950_v51 }
 0x293   : > { %981 = vmatprep.subr.mxu0 %v949_v37 }
 0x294   : > { %982 = vmatpush1.msra.mxu0 %v948_v10 }
 0x295   : > { %983 = vmatprep.subr.mxu0 %v947_v52 }
 0x296   : > { %984 = vmatpush1.msra.mxu0 %v946_v28 }
 0x297   : > { %985 = vmatprep.subr.mxu0 %v945_v55 }
 0x298   : > { %986 = vmatpush1.msra.mxu0 %v944_v41 }
 0x299   : > { %1245 = vmatmul.mubr.msk.f32.vlgmr.msra.gmra.mxu0 %vm636_vm0, %v401_v54 }
 0x359   : > { %v1021_v48 = vpop.f32.mrf.mxu0 }
 0x35a   : > { %v1026_v30 = vmul.f32 %v1021_v48, %v1021_v48 }
 0x35b   : > { %v1023_v49 = vpop.f32.mrf.mxu0 }
 0x35c   : > { %v1030_v50 = vrot.slane %v1026_v30, 1  ;;  %v1027_v32 = vmul.f32 %v1023_v49, %v1023_v49  ;;  %v1036_v57 = vrot.slane %v1026_v30, 2 }
 0x35e   : > { %v1034_v56 = vadd.f32 %v1030_v50, %v1026_v30  ;;  %v1031_v58 = vrot.slane %v1027_v32, 1  ;;  %v1037_v1 = vrot.slane %v1027_v32, 2 }
 0x360   : > { %v1040_v62 = vadd.f32 %v1036_v57, %v1034_v56  ;;  %v1035_v63 = vadd.f32 %v1031_v58, %v1027_v32 }
 0x362   : > { %v1053_v2 = vsub.f32 %v1040_v62, %v1655_v40  ;;  %v1041_v3 = vadd.f32 %v1037_v1, %v1035_v63 }
 0x364   : > { %v1055_v26 = vmul.f32 %v1675_v60, %v1053_v2  ;;  %v1054_v6 = vsub.f32 %v1041_v3, %v1659_v47  ;;  %v1133_v47 = vadd.f32 %v1132_v17, %v1131_v14 }
 0x366   : > { %v1056_v9 = vmul.f32 %v1678_v0, %v1054_v6  ;;  %v1069_v24 = vmul.f32 %v1055_v26, %v1055_v26  ;;  %v1134_v25 = vrot.slane %v1133_v47, 1 }
 0x368   : > { %v1070_v11 = vmul.f32 %v1056_v9, %v1056_v9  ;;  %v1135_v46 = vadd.f32 %v1134_v25, %v1133_v47 }
 0x36a   : > { %v1083_v13 = vcombine.low %v1069_v24, %v1070_v11 }
 0x36c   : > { %v1091_v40 = vrot.slane %v1083_v13, %v1090_v44 }
 0x36e   : > { %v1093_v21 = vsel %vm1092_vm9, %v1091_v40, 0.0 }
 0x36f   : > { %v1094_v20 = vrot.slane %v1093_v21, 4 }
 0x371   : > { %v1095_v60 = vadd.f32 %v1094_v20, %v1093_v21 }
 0x373   : > { %v1096_v22 = vrot.slane %v1095_v60, 2 }
 0x375   : > { %v1097_v0 = vadd.f32 %v1096_v22, %v1095_v60 }
 0x377   : > { %v1098_v15 = vrot.slane %v1097_v0, 1 }
 0x379   : > { %v1099_v29 = vadd.f32 %v1098_v15, %v1097_v0 }
 0x37b   : > { %v1137_v33 = vsel %vm1136_vm10, %v1099_v29, %v1117_v31 }
 0x37c   : > { %v1138_v45 = vsel %vm1092_vm9, %v1137_v33, %v1135_v46 }
 0x37d   : > { %v1140_v34 = vsel %vm1139_vm11, %v1138_v45, 0.0 }
 0x37e   : > { %1141 = vst [vmem:[%s369_s28] sm:$0xff] %v1140_v34 }
 0x37f   : > { %1351 = shalt.err (!%p1348_p3)
}
 0x380   : > { %s1352_s27 = scalar_lea.hbm %s1728_s12, 128  ;;  %s1356_s28 = scalar_lea.hbm %s1773_s10, 256 }
 0x381   : > { %p1353_p4 = scmp.ne.s32.totalorder %s1728_s12, %s1352_s27  ;;  %p1357_p9 = scmp.lt.s32.totalorder %s1728_s12, %s1773_s10 }
 0x382   : > { %p1358_p10 = scmp.lt.s32.totalorder %s1356_s28, %s1352_s27 }
 0x383   : > { %p1354_p7 = pnand %p1353_p4, %p1502_p5 }
 0x384   : > { %p1359_p11 = por %p1358_p10, %p1357_p9 }
 0x385   : > { %p1355_p8 = pneg %p1354_p7 }
 0x387   : > { %p1360_p12 = pnand %p1359_p11, %p1355_p8 }
 0x389   : > { %1363 = shalt.err (!%p1360_p12)
}
 0x38a   : > { %1250 = dma.vmem_to_hbm [thread:$0]  (%p1502_p5), %s1157_s29, 128, %s1728_s12, %s1143_s13  }
 0x38b PF: > { %p1256_p13 = scmp.ge.s32.totalorder %s1398_s18, 2  ;;  %s1168_s19 = sand.u32 1, %s1386_s15  }
 0x38c   : > { %s1169_s9 = scalar_lea.sflag [#allocation4], %s1168_s19 }
 0x38d   : > { %p1253_p0 = pnand %p1256_p13, %p1506_p6 }
 0x38f   : > { %p1254_p1 = pneg %p1253_p0 }
 0x391   : > { %1381 = dma.done.wait (%p1254_p1), %s1169_s9, 128  }
 0x392   : > { %1383 = vsyncadd (%p1254_p1), %s1169_s9, 4294967168  ;;  %p22_p2 = scmp.ge.s32.totalorder %s1489_s20, 4   ;;  %s1776_s15 = smov %s1390_s16 }
 0x393   : > { %s1777_s16 = smov %s1394_s17  ;;  %s1778_s17 = smov %s1500_s23 }
 0x394   : > { %s1779_s18 = smov %s1489_s20  ;;  %24 = sbr.rel (!%p22_p2) target bundleno = 6 (0x6), region = 98 }
 0x399   :  { %1174 = vsyncpa [#allocation4], 1 }
 0x39a   :  { %1176 = vsyncpa [#allocation4 + $0x1], 1 }

</bundles_post_ra>
